<compile_context>
chip_gen: v7x
topology: tpu7x:2x2x1
jax: 0.10.0
libtpu: 0.0.40
codegen_flags: <defaults>
</compile_context>

<pallas_src>
import functools

import jax
import jax.numpy as jnp
from jax import lax
from jax.experimental import pallas as pl
from jax.experimental.pallas import tpu as pltpu

IN_DIM = 4
HIDDEN = 50
OUT_DIM = 3

K_PAD = 8       # first-layer contraction dim, padded to a sublane multiple
H_PAD = 128     # hidden width, padded lane-dense
O_PAD = 128     # output width, padded lane-dense (sliced back to 3 outside)

NEG_BIG = -1e30  # padded last-layer bias -> exp(padded logit) == 0 in softmax


def _round_up(x, m):
    return (x + m - 1) // m * m


def _mlp_softmax_kernel(*refs, n_hidden_layers):
    if n_hidden_layers > 0:
        x_ref, w1_ref, b1_ref, wh_ref, bh_ref, wl_ref, bl_ref, o_ref = refs
    else:
        x_ref, w1_ref, b1_ref, wl_ref, bl_ref, o_ref = refs
        wh_ref = bh_ref = None

    # First layer + ReLU (bf16 MXU matmul, f32 accumulate).
    h = jnp.dot(x_ref[...], w1_ref[...], preferred_element_type=jnp.float32)
    h = jnp.maximum(h + b1_ref[...], 0.0)

    # Hidden layers.
    if n_hidden_layers > 0:
        if n_hidden_layers <= 8:
            # Small fixed depth: static unroll is fine (low vreg pressure).
            for i in range(n_hidden_layers):
                h = jnp.dot(h.astype(jnp.bfloat16), wh_ref[i],
                            preferred_element_type=jnp.float32)
                h = jnp.maximum(h + bh_ref[i], 0.0)
        else:
            # Deep stacks: keep vreg live ranges flat with a fori_loop.
            def body(i, hc):
                hn = jnp.dot(hc.astype(jnp.bfloat16), wh_ref[i],
                             preferred_element_type=jnp.float32)
                return jnp.maximum(hn + bh_ref[i], 0.0)
            h = lax.fori_loop(0, n_hidden_layers, body, h)

    # Last layer (padded output columns carry a huge negative bias).
    logits = jnp.dot(h.astype(jnp.bfloat16), wl_ref[...],
                     preferred_element_type=jnp.float32) + bl_ref[...]

    # Softmax over the (lane) feature axis == PyTorch dim=1 for [B, F].
    m = jnp.max(logits, axis=-1, keepdims=True)
    e = jnp.exp(logits - m)
    denom = jnp.sum(e, axis=-1, keepdims=True)
    o_ref[...] = (e * pl.reciprocal(denom, approx=True)).astype(o_ref.dtype)


def mlp_forward(x, w1, b1, wh, bh, wl, bl, *, n_hidden_layers):
    """x: [B, 4] f32. Weights in [in, out] layout (transposed vs nn.Linear)."""
    B = x.shape[0]

    # ---- batch tiling: multiple of 8 (f32 sublane); tile large batches.
    B8 = _round_up(B, 8)
    if B8 <= 512:
        tile_b, b_pad = B8, B8
    else:
        tile_b = 512
        b_pad = _round_up(B8, tile_b)
    n_grid = b_pad // tile_b

    # ---- pad to lane/sublane-dense shapes; cast matmul inputs to bf16.
    xp = jnp.zeros((b_pad, K_PAD), jnp.bfloat16)
    xp = xp.at[:B, :IN_DIM].set(x.astype(jnp.bfloat16))
    w1p = jnp.zeros((K_PAD, H_PAD), jnp.bfloat16)
    w1p = w1p.at[:IN_DIM, :HIDDEN].set(w1.astype(jnp.bfloat16))
    b1p = jnp.zeros((1, H_PAD), jnp.float32).at[:, :HIDDEN].set(b1)
    wlp = jnp.zeros((H_PAD, O_PAD), jnp.bfloat16)
    wlp = wlp.at[:HIDDEN, :OUT_DIM].set(wl.astype(jnp.bfloat16))
    blp = jnp.full((1, O_PAD), NEG_BIG, jnp.float32).at[:, :OUT_DIM].set(bl)

    in_arrays = [xp, w1p, b1p]
    in_specs = [
        pl.BlockSpec((tile_b, K_PAD), lambda i: (i, 0)),
        pl.BlockSpec((K_PAD, H_PAD), lambda i: (0, 0)),   # weights resident
        pl.BlockSpec((1, H_PAD), lambda i: (0, 0)),
    ]
    if n_hidden_layers > 0:
        whp = jnp.zeros((n_hidden_layers, H_PAD, H_PAD), jnp.bfloat16)
        whp = whp.at[:, :HIDDEN, :HIDDEN].set(wh.astype(jnp.bfloat16))
        bhp = jnp.zeros((n_hidden_layers, 1, H_PAD), jnp.float32)
        bhp = bhp.at[:, :, :HIDDEN].set(bh)
        in_arrays += [whp, bhp]
        in_specs += [
            pl.BlockSpec((n_hidden_layers, H_PAD, H_PAD), lambda i: (0, 0, 0)),
            pl.BlockSpec((n_hidden_layers, 1, H_PAD), lambda i: (0, 0, 0)),
        ]
    in_arrays += [wlp, blp]
    in_specs += [
        pl.BlockSpec((H_PAD, O_PAD), lambda i: (0, 0)),
        pl.BlockSpec((1, O_PAD), lambda i: (0, 0)),
    ]

    flops = 2 * b_pad * (K_PAD * H_PAD
                         + n_hidden_layers * H_PAD * H_PAD
                         + H_PAD * O_PAD)
    bytes_in = sum(int(a.size) * a.dtype.itemsize for a in in_arrays)
    bytes_out = b_pad * O_PAD * 4
    cost = pl.CostEstimate(flops=flops,
                           transcendentals=b_pad * (O_PAD + 1),
                           bytes_accessed=bytes_in + bytes_out)

    kernel = functools.partial(_mlp_softmax_kernel,
                               n_hidden_layers=n_hidden_layers)

    out_pad = pl.pallas_call(
        kernel,
        out_shape=jax.ShapeDtypeStruct((b_pad, O_PAD), jnp.float32),
        grid=(n_grid,),
        in_specs=in_specs,
        out_specs=pl.BlockSpec((tile_b, O_PAD), lambda i: (i, 0)),
        compiler_params=pltpu.CompilerParams(
            dimension_semantics=("parallel",)),
        cost_estimate=cost,
    )(*in_arrays)

    return out_pad[:B, :OUT_DIM]


def init_params(key, n_hidden_layers):
    """Deterministic parameter init (uniform, PyTorch-Linear-style bounds)."""
    def linear(key, fan_in, fan_out):
        kw, kb = jax.random.split(key)
        bound = 1.0 / jnp.sqrt(fan_in)
        w = jax.random.uniform(kw, (fan_in, fan_out), jnp.float32, -bound, bound)
        b = jax.random.uniform(kb, (1, fan_out), jnp.float32, -bound, bound)
        return w, b

    keys = jax.random.split(key, 2 + max(n_hidden_layers, 1))
    w1, b1 = linear(keys[0], IN_DIM, HIDDEN)

    whs, bhs = [], []
    for i in range(n_hidden_layers):
        w, b = linear(keys[1 + i], HIDDEN, HIDDEN)
        whs.append(w)
        bhs.append(b)
    if n_hidden_layers > 0:
        wh = jnp.stack(whs, axis=0)   # [n_hidden, 50, 50]
        bh = jnp.stack(bhs, axis=0)   # [n_hidden, 1, 50]
    else:
        wh = None
        bh = None

    wl, bl = linear(keys[-1], HIDDEN, OUT_DIM)
    return w1, b1, wh, bh, wl, bl


if __name__ == "__main__":
    n_hidden_layers = 2   # Instance.n_hidden_layers
    batch = 8

    key = jax.random.PRNGKey(0)
    k_x, k_p = jax.random.split(key)
    x = jax.random.normal(k_x, (batch, IN_DIM), dtype=jnp.float32)
    w1, b1, wh, bh, wl, bl = init_params(k_p, n_hidden_layers)

    y = mlp_forward(x, w1, b1, wh, bh, wl, bl, n_hidden_layers=n_hidden_layers)
    y = jax.block_until_ready(y)

    # Sanity: output shape [batch, 3], rows sum to ~1 (softmax; approx reciprocal).
    assert y.shape == (batch, OUT_DIM)
    assert jnp.allclose(jnp.sum(y, axis=1), 1.0, atol=5e-3)

    # Cross-check against a plain-JAX f32 reference (bf16 matmuls -> loose tol).
    h = jnp.maximum(x @ w1 + b1, 0.0)
    for i in range(n_hidden_layers):
        h = jnp.maximum(h @ wh[i] + bh[i], 0.0)
    logits = h @ wl + bl
    ref = jax.nn.softmax(logits, axis=1)
    assert jnp.allclose(y, ref, atol=2e-2), float(jnp.max(jnp.abs(y - ref)))

    print("KERNEL_OK")
</pallas_src>

<mosaic_0001>
module attributes {stable_mosaic.version = 11 : i64} {
  func.func @_mlp_softmax_kernel(%arg0: i32, %arg1: memref<8x8xbf16, #tpu.memory_space<vmem>>, %arg2: memref<8x128xbf16, #tpu.memory_space<vmem>>, %arg3: memref<1x128xf32, #tpu.memory_space<vmem>>, %arg4: memref<2x128x128xbf16, #tpu.memory_space<vmem>>, %arg5: memref<2x1x128xf32, #tpu.memory_space<vmem>>, %arg6: memref<128x128xbf16, #tpu.memory_space<vmem>>, %arg7: memref<1x128xf32, #tpu.memory_space<vmem>>, %arg8: memref<8x128xf32, #tpu.memory_space<vmem>>) attributes {dimension_semantics = [#tpu.dimension_semantics<parallel>], iteration_bounds = array<i64: 1>, scalar_prefetch = 0 : i64, scratch_operands = 0 : i64, tpu.core_type = #tpu.core_type<tc>, window_params = [{transform_indices = @transform_0, window_bounds = array<i64: 8, 8>}, {pipeline_mode = #tpu.pipeline_mode<synchronous>, transform_indices = @transform_1, window_bounds = array<i64: 8, 128>}, {pipeline_mode = #tpu.pipeline_mode<synchronous>, transform_indices = @transform_2, window_bounds = array<i64: 1, 128>}, {pipeline_mode = #tpu.pipeline_mode<synchronous>, transform_indices = @transform_3, window_bounds = array<i64: 2, 128, 128>}, {pipeline_mode = #tpu.pipeline_mode<synchronous>, transform_indices = @transform_4, window_bounds = array<i64: 2, 1, 128>}, {pipeline_mode = #tpu.pipeline_mode<synchronous>, transform_indices = @transform_5, window_bounds = array<i64: 128, 128>}, {pipeline_mode = #tpu.pipeline_mode<synchronous>, transform_indices = @transform_6, window_bounds = array<i64: 1, 128>}, {transform_indices = @transform_7, window_bounds = array<i64: 8, 128>}]} {
    %c0 = arith.constant 0 : index
    %c0_0 = arith.constant 0 : index
    %0 = vector.load %arg1[%c0, %c0_0] : memref<8x8xbf16, #tpu.memory_space<vmem>>, vector<8x8xbf16>
    %c0_1 = arith.constant 0 : index
    %c0_2 = arith.constant 0 : index
    %1 = vector.load %arg2[%c0_1, %c0_2] : memref<8x128xbf16, #tpu.memory_space<vmem>>, vector<8x128xbf16>
    %cst = arith.constant dense<0.000000e+00> : vector<8x128xf32>
    %2 = tpu.matmul %0, %1, %cst {dimension_numbers = #tpu.dot_dimension_numbers<[1], [0], [0], [1], [0, 0, 1, 1], [], []>} : vector<8x8xbf16>, vector<8x128xbf16>, vector<8x128xf32> -> vector<8x128xf32>
    %c0_3 = arith.constant 0 : index
    %c0_4 = arith.constant 0 : index
    %3 = vector.load %arg3[%c0_3, %c0_4] : memref<1x128xf32, #tpu.memory_space<vmem>>, vector<1x128xf32>
    %4 = vector.broadcast %3 : vector<1x128xf32> to vector<8x128xf32>
    %5 = arith.addf %2, %4 : vector<8x128xf32>
    %cst_5 = arith.constant 0.000000e+00 : f32
    %6 = vector.broadcast %cst_5 : f32 to vector<8x128xf32>
    %7 = arith.maximumf %5, %6 : vector<8x128xf32>
    %8 = arith.truncf %7 : vector<8x128xf32> to vector<8x128xbf16>
    %c0_6 = arith.constant 0 : index
    %c0_7 = arith.constant 0 : index
    %c0_8 = arith.constant 0 : index
    %9 = vector.load %arg4[%c0_6, %c0_7, %c0_8] : memref<2x128x128xbf16, #tpu.memory_space<vmem>>, vector<1x128x128xbf16>
    %10 = vector.shape_cast %9 : vector<1x128x128xbf16> to vector<128x128xbf16>
    %cst_9 = arith.constant dense<0.000000e+00> : vector<8x128xf32>
    %11 = tpu.matmul %8, %10, %cst_9 {dimension_numbers = #tpu.dot_dimension_numbers<[1], [0], [0], [1], [0, 0, 1, 1], [], []>} : vector<8x128xbf16>, vector<128x128xbf16>, vector<8x128xf32> -> vector<8x128xf32>
    %c0_10 = arith.constant 0 : index
    %c0_11 = arith.constant 0 : index
    %c0_12 = arith.constant 0 : index
    %12 = vector.load %arg5[%c0_10, %c0_11, %c0_12] : memref<2x1x128xf32, #tpu.memory_space<vmem>>, vector<1x1x128xf32>
    %13 = vector.shape_cast %12 : vector<1x1x128xf32> to vector<1x128xf32>
    %14 = vector.broadcast %13 : vector<1x128xf32> to vector<8x128xf32>
    %15 = arith.addf %11, %14 : vector<8x128xf32>
    %cst_13 = arith.constant 0.000000e+00 : f32
    %16 = vector.broadcast %cst_13 : f32 to vector<8x128xf32>
    %17 = arith.maximumf %15, %16 : vector<8x128xf32>
    %18 = arith.truncf %17 : vector<8x128xf32> to vector<8x128xbf16>
    %c1 = arith.constant 1 : index
    %c0_14 = arith.constant 0 : index
    %c0_15 = arith.constant 0 : index
    %19 = vector.load %arg4[%c1, %c0_14, %c0_15] : memref<2x128x128xbf16, #tpu.memory_space<vmem>>, vector<1x128x128xbf16>
    %20 = vector.shape_cast %19 : vector<1x128x128xbf16> to vector<128x128xbf16>
    %cst_16 = arith.constant dense<0.000000e+00> : vector<8x128xf32>
    %21 = tpu.matmul %18, %20, %cst_16 {dimension_numbers = #tpu.dot_dimension_numbers<[1], [0], [0], [1], [0, 0, 1, 1], [], []>} : vector<8x128xbf16>, vector<128x128xbf16>, vector<8x128xf32> -> vector<8x128xf32>
    %c1_17 = arith.constant 1 : index
    %c0_18 = arith.constant 0 : index
    %c0_19 = arith.constant 0 : index
    %22 = vector.load %arg5[%c1_17, %c0_18, %c0_19] : memref<2x1x128xf32, #tpu.memory_space<vmem>>, vector<1x1x128xf32>
    %23 = vector.shape_cast %22 : vector<1x1x128xf32> to vector<1x128xf32>
    %24 = vector.broadcast %23 : vector<1x128xf32> to vector<8x128xf32>
    %25 = arith.addf %21, %24 : vector<8x128xf32>
    %cst_20 = arith.constant 0.000000e+00 : f32
    %26 = vector.broadcast %cst_20 : f32 to vector<8x128xf32>
    %27 = arith.maximumf %25, %26 : vector<8x128xf32>
    %28 = arith.truncf %27 : vector<8x128xf32> to vector<8x128xbf16>
    %c0_21 = arith.constant 0 : index
    %c0_22 = arith.constant 0 : index
    %29 = vector.load %arg6[%c0_21, %c0_22] : memref<128x128xbf16, #tpu.memory_space<vmem>>, vector<128x128xbf16>
    %cst_23 = arith.constant dense<0.000000e+00> : vector<8x128xf32>
    %30 = tpu.matmul %28, %29, %cst_23 {dimension_numbers = #tpu.dot_dimension_numbers<[1], [0], [0], [1], [0, 0, 1, 1], [], []>} : vector<8x128xbf16>, vector<128x128xbf16>, vector<8x128xf32> -> vector<8x128xf32>
    %c0_24 = arith.constant 0 : index
    %c0_25 = arith.constant 0 : index
    %31 = vector.load %arg7[%c0_24, %c0_25] : memref<1x128xf32, #tpu.memory_space<vmem>>, vector<1x128xf32>
    %32 = vector.broadcast %31 : vector<1x128xf32> to vector<8x128xf32>
    %33 = arith.addf %30, %32 : vector<8x128xf32>
    %cst_26 = arith.constant dense<0xFF800000> : vector<8xf32>
    %34 = vector.multi_reduction <maximumf>, %33, %cst_26 [1] : vector<8x128xf32> to vector<8xf32>
    %35 = vector.shape_cast %34 : vector<8xf32> to vector<8x1xf32>
    %36 = vector.broadcast %35 : vector<8x1xf32> to vector<8x128xf32>
    %37 = arith.subf %33, %36 : vector<8x128xf32>
    %38 = math.exp %37 : vector<8x128xf32>
    %cst_27 = arith.constant dense<0.000000e+00> : vector<8xf32>
    %39 = vector.multi_reduction <add>, %38, %cst_27 [1] : vector<8x128xf32> to vector<8xf32>
    %40 = vector.shape_cast %39 : vector<8xf32> to vector<8x1xf32>
    %41 = tpu.reciprocal %40 {approx = true} : vector<8x1xf32> -> vector<8x1xf32>
    %42 = vector.broadcast %41 : vector<8x1xf32> to vector<8x128xf32>
    %43 = arith.mulf %38, %42 : vector<8x128xf32>
    %c0_28 = arith.constant 0 : index
    %c0_29 = arith.constant 0 : index
    %44 = vector.load %arg8[%c0_28, %c0_29] : memref<8x128xf32, #tpu.memory_space<vmem>>, vector<8x128xf32>
    tpu.vector_store %arg8[%c0_28, %c0_29], %43 {strides = array<i32>} : memref<8x128xf32, #tpu.memory_space<vmem>>, vector<8x128xf32>,
    return
  }
  func.func @transform_0(%arg0: i32) -> (i32, i32) {
    %c0_i32 = arith.constant 0 : i32
    %c0_i32_0 = arith.constant 0 : i32
    return %arg0, %c0_i32 : i32, i32
  }
  func.func @transform_1(%arg0: i32) -> (i32, i32) {
    %c0_i32 = arith.constant 0 : i32
    %c0_i32_0 = arith.constant 0 : i32
    %c0_i32_1 = arith.constant 0 : i32
    return %c0_i32, %c0_i32_0 : i32, i32
  }
  func.func @transform_2(%arg0: i32) -> (i32, i32) {
    %c0_i32 = arith.constant 0 : i32
    %c0_i32_0 = arith.constant 0 : i32
    %c0_i32_1 = arith.constant 0 : i32
    return %c0_i32, %c0_i32_0 : i32, i32
  }
  func.func @transform_3(%arg0: i32) -> (i32, i32, i32) {
    %c0_i32 = arith.constant 0 : i32
    %c0_i32_0 = arith.constant 0 : i32
    %c0_i32_1 = arith.constant 0 : i32
    %c0_i32_2 = arith.constant 0 : i32
    return %c0_i32, %c0_i32_0, %c0_i32_1 : i32, i32, i32
  }
  func.func @transform_4(%arg0: i32) -> (i32, i32, i32) {
    %c0_i32 = arith.constant 0 : i32
    %c0_i32_0 = arith.constant 0 : i32
    %c0_i32_1 = arith.constant 0 : i32
    %c0_i32_2 = arith.constant 0 : i32
    return %c0_i32, %c0_i32_0, %c0_i32_1 : i32, i32, i32
  }
  func.func @transform_5(%arg0: i32) -> (i32, i32) {
    %c0_i32 = arith.constant 0 : i32
    %c0_i32_0 = arith.constant 0 : i32
    %c0_i32_1 = arith.constant 0 : i32
    return %c0_i32, %c0_i32_0 : i32, i32
  }
  func.func @transform_6(%arg0: i32) -> (i32, i32) {
    %c0_i32 = arith.constant 0 : i32
    %c0_i32_0 = arith.constant 0 : i32
    %c0_i32_1 = arith.constant 0 : i32
    return %c0_i32, %c0_i32_0 : i32, i32
  }
  func.func @transform_7(%arg0: i32) -> (i32, i32) {
    %c0_i32 = arith.constant 0 : i32
    %c0_i32_0 = arith.constant 0 : i32
    return %arg0, %c0_i32 : i32, i32
  }
}

</mosaic_0001>

<bundles_post_ra>
// kernel: tpu_custom_call.1
= control target key start
LH: loop header
LB: loop body
LE: loop exit
PB: predicated region body
PF: predicated region fallthrough
CT: control target
= control target key end

     0   :  { %12 = vsyncpa [#allocation3], 0  ;;  %s938_s0 = inlined_call_operand.hbm [shape: bf16[8,8], index: 0, kind: input, shape index: {}]   ;;  %s939_s1 = inlined_call_operand.hbm [shape: bf16[8,128], index: 1, kind: input, shape index: {}]   ;;  %s940_s2 = inlined_call_operand.vmem [shape: f32[1,128], index: 2, kind: input, shape index: {}]   ;;  %s941_s3 = inlined_call_operand.hbm [shape: bf16[2,128,128], index: 3, kind: input, shape index: {}]   ;;  %s942_s4 = inlined_call_operand.vmem [shape: f32[2,1,128], index: 4, kind: input, shape index: {}]   ;;  %s943_s5 = inlined_call_operand.hbm [shape: bf16[128,128], index: 5, kind: input, shape index: {}]   ;;  %s944_s6 = inlined_call_operand.vmem [shape: f32[1,128], index: 6, kind: input, shape index: {}]   ;;  %s945_s7 = inlined_call_operand.hbm [shape: f32[8,128], index: 7, kind: output, shape index: {}]  }
   0x1   :  { %13 = vsyncpa [#allocation6], 0 }
   0x2   :  { %14 = vsyncpa [#allocation9], 0 }
   0x3   :  { %15 = vsyncpa [#allocation4], 0  ;;  %s784_s24 = smov [#allocation5]   ;;  %s785_s26 = smov [#allocation2]  }
   0x4   :  { %s32_s25 = sshll.u32 %s784_s24, 4  ;;  %s22_s27 = sshll.u32 %s785_s26, 4  ;;  %s33_s25 = int_to_ptr.vmem [resolvable:$true] %s32_s25  ;;  %s23_s27 = int_to_ptr.vmem [resolvable:$true] %s22_s27 }
   0x5   :  { %s666_s30 = scalar_lea.hbm %s939_s1, 64 }
   0x6   :  { %p667_p0 = scmp.ne.s32.totalorder %s939_s1, %s666_s30  ;;  %p670_p1 = scmp.lt.u32.totalorder %s666_s30, %s939_s1 }
   0x8   :  { %p672_p2 = pnand %p670_p1, %p667_p0 }
   0xa   :  { %675 = shalt.err (!%p672_p2)
}
   0xb   :  { %s676_s12 = scalar_lea.vmem %s33_s25, 64  ;;  %p681_p4 = scmp.lt.s32.totalorder %s33_s25, %s33_s25 }
   0xc   :  { %p677_p3 = scmp.ne.s32.totalorder %s33_s25, %s676_s12  ;;  %p682_p5 = scmp.lt.s32.totalorder %s676_s12, %s676_s12 }
   0xe   :  { %p683_p6 = por %p682_p5, %p681_p4 }
  0x10   :  { %p684_p7 = pnand %p683_p6, %p677_p3 }
  0x12   :  { %687 = shalt.err (!%p684_p7)
}
  0x13   :  { %35 = dma.hbm_to_vmem [thread:$0]  %s939_s1, 64, %s33_s25, [#allocation6]  }
  0x14   :  { %s688_s17 = scalar_lea.hbm %s938_s0, 64 }
  0x15   :  { %p689_p8 = scmp.ne.s32.totalorder %s938_s0, %s688_s17  ;;  %p692_p9 = scmp.lt.u32.totalorder %s688_s17, %s938_s0 }
  0x17   :  { %p694_p10 = pnand %p692_p9, %p689_p8 }
  0x19   :  { %697 = shalt.err (!%p694_p10)
}
  0x1a   :  { %s698_s22 = scalar_lea.vmem %s23_s27, 64  ;;  %p703_p12 = scmp.lt.s32.totalorder %s23_s27, %s23_s27 }
  0x1b   :  { %p699_p11 = scmp.ne.s32.totalorder %s23_s27, %s698_s22  ;;  %p704_p13 = scmp.lt.s32.totalorder %s698_s22, %s698_s22 }
  0x1d   :  { %p705_p0 = por %p704_p13, %p703_p12 }
  0x1f   :  { %p706_p1 = pnand %p705_p0, %p699_p11 }
  0x21   :  { %709 = shalt.err (!%p706_p1)
}
  0x22   :  { %25 = dma.hbm_to_vmem [thread:$0]  %s938_s0, 64, %s23_s27, [#allocation3]  }
  0x23   :  { %s786_s24 = smov [#allocation7]   ;;  %s710_s29 = scalar_lea.hbm %s941_s3, 2048 }
  0x24   :  { %s43_s25 = sshll.u32 %s786_s24, 4  ;;  %p711_p2 = scmp.ne.s32.totalorder %s941_s3, %s710_s29  ;;  %s44_s25 = int_to_ptr.vmem [resolvable:$true] %s43_s25 }
  0x25   :  { %p714_p3 = scmp.lt.u32.totalorder %s710_s29, %s941_s3 }
  0x27   :  { %p716_p4 = pnand %p714_p3, %p711_p2 }
  0x29   :  { %719 = shalt.err (!%p716_p4)
}
  0x2a   :  { %s720_s11 = scalar_lea.vmem %s44_s25, 2048  ;;  %p725_p6 = scmp.lt.s32.totalorder %s44_s25, %s44_s25 }
  0x2b   :  { %p721_p5 = scmp.ne.s32.totalorder %s44_s25, %s720_s11  ;;  %p726_p7 = scmp.lt.s32.totalorder %s720_s11, %s720_s11 }
  0x2d   :  { %p727_p8 = por %p726_p7, %p725_p6 }
  0x2f   :  { %p728_p9 = pnand %p727_p8, %p721_p5 }
  0x31   :  { %731 = shalt.err (!%p728_p9)
}
  0x32   :  { %s787_s0 = smov 64   ;;  %s788_s27 = smov 4  }
  0x33   :  { %49 = dma.hbm_to_vmem [thread:$0]  %s941_s3, 2048, %s44_s25, [#allocation6], %s787_s0, %s787_s0, %s788_s27  }
  0x34   :  { %s789_s14 = smov [#allocation8]   ;;  %s732_s18 = scalar_lea.hbm %s943_s5, 1024 }
  0x35   :  { %s57_s15 = sshll.u32 %s789_s14, 4  ;;  %p733_p10 = scmp.ne.s32.totalorder %s943_s5, %s732_s18  ;;  %s58_s15 = int_to_ptr.vmem [resolvable:$true] %s57_s15 }
  0x36   :  { %p736_p11 = scmp.lt.u32.totalorder %s732_s18, %s943_s5 }
  0x38   :  { %p738_p12 = pnand %p736_p11, %p733_p10 }
  0x3a   :  { %741 = shalt.err (!%p738_p12)
}
  0x3b   :  { %s742_s1 = scalar_lea.vmem %s58_s15, 1024  ;;  %p747_p0 = scmp.lt.s32.totalorder %s58_s15, %s58_s15 }
  0x3c   :  { %p743_p13 = scmp.ne.s32.totalorder %s58_s15, %s742_s1  ;;  %p748_p1 = scmp.lt.s32.totalorder %s742_s1, %s742_s1 }
  0x3e   :  { %p749_p2 = por %p748_p1, %p747_p0 }
  0x40   :  { %p750_p3 = pnand %p749_p2, %p743_p13 }
  0x42   :  { %753 = shalt.err (!%p750_p3)
}
  0x43   :  { %63 = dma.hbm_to_vmem [thread:$0]  %s943_s5, 1024, %s58_s15, [#allocation9], %s787_s0, %s787_s0, %s788_s27  }
  0x44   :  { %776 = dma.done.wait [#allocation3], 64  }
  0x45   :  { %777 = vsyncadd [#allocation3], 4294967232 }
  0x46   :  { %778 = dma.done.wait [#allocation6], 2112  }
  0x47   :  { %779 = vsyncadd [#allocation6], 4294965184 }
  0x48   :  { %780 = dma.done.wait [#allocation9], 1024  }
  0x49   :  { %781 = vsyncadd [#allocation9], 4294966272  ;;  %v790_v0 = vmov 0.0   ;;  %vm791_vm0 = vmmov 0   ;;  %vm92_vm1 = vcmask 1043456   ;;  %vm88_vm2 = vcmask 64512  }
  0x4a   :  { %563 = vmatprep.subr.bf16.mxu0 %v790_v0  ;;  %565 = vmatprep.mubr.msk.bf16.mxu0 %vm791_vm0, %v790_v0  ;;  %v80_v1 = vld [vmem:[#allocation5] sm:$0xf]  ;;  %v638_v3 = vld [vmem:[#allocation7] sm:$0xff]   ;;  %v79_v4 = vld [vmem:[#allocation2] sm:$0xf] }
  0x4b   :  { %569 = vmatprep.subr.bf16.mxu1 %v790_v0  ;;  %585 = vmatprep.mubr.msk.bf16.mxu1 %vm791_vm0, %v790_v0  ;;  %v94_v2 = vsel %vm92_vm1, %v80_v1, 0  ;;  %v639_v5 = vld [vmem:[#allocation7 + $0x8] sm:$0xff]   ;;  %v640_v6 = vld [vmem:[#allocation7 + $0x10] sm:$0xff]   ;;  %v641_v7 = vld [vmem:[#allocation7 + $0x18] sm:$0xff]  }
  0x4c   :  { %564 = vmatpush3.bf16.msra.mxu0 %v94_v2  ;;  %570 = vmatpush3.bf16.msra.mxu1 %v638_v3  ;;  %v642_v8 = vld [vmem:[#allocation7 + $0x20] sm:$0xff]   ;;  %v643_v9 = vld [vmem:[#allocation7 + $0x28] sm:$0xff]   ;;  %v644_v10 = vld [vmem:[#allocation7 + $0x30] sm:$0xff]  }
  0x4d   :  { %589 = vmatprep.subr.bf16.mxu0 %v790_v0  ;;  %571 = vmatprep.subr.bf16.mxu1 %v790_v0  ;;  %v645_v11 = vld [vmem:[#allocation7 + $0x38] sm:$0xff]   ;;  %v646_v12 = vld [vmem:[#allocation7 + $0x40] sm:$0xff]   ;;  %v647_v13 = vld [vmem:[#allocation7 + $0x48] sm:$0xff]  }
  0x4e   :  { %v648_v14 = vld [vmem:[#allocation7 + $0x50] sm:$0xff]   ;;  %v649_v15 = vld [vmem:[#allocation7 + $0x58] sm:$0xff]   ;;  %v650_v16 = vld [vmem:[#allocation7 + $0x60] sm:$0xff]  }
  0x4f   :  { %566 = vmatmul.mubr.msk.bf16.vlgmr.msra.gmra.mrb[0].mxu0 %vm88_vm2, %v79_v4  ;;  %v651_v17 = vld [vmem:[#allocation7 + $0x68] sm:$0xff]   ;;  %v504_v18 = vld [vmem:[%s940_s2] ss:$0 sm:$0xff]  ;;  %v652_v26 = vld [vmem:[#allocation7 + $0x70] sm:$0xff]  }
  0x50   :  { %605 = vmatprep.mubr.msk.bf16.mxu0 %vm791_vm0, %v790_v0  ;;  %572 = vmatpush3.bf16.msra.mxu1 %v639_v5  ;;  %v653_v27 = vld [vmem:[#allocation7 + $0x78] sm:$0xff]   ;;  %v654_v28 = vld [vmem:[#allocation8] sm:$0xff]   ;;  %v655_v29 = vld [vmem:[#allocation8 + $0x8] sm:$0xff]  }
  0x51   :  { %573 = vmatprep.subr.bf16.mxu1 %v790_v0  ;;  %590 = vmatpush3.bf16.msra.mxu0 %v646_v12  ;;  %v656_v30 = vld [vmem:[#allocation8 + $0x10] sm:$0xff]   ;;  %v657_v31 = vld [vmem:[#allocation8 + $0x18] sm:$0xff]   ;;  %v658_v32 = vld [vmem:[#allocation8 + $0x20] sm:$0xff]  }
  0x52   :  { %591 = vmatprep.subr.bf16.mxu0 %v790_v0  ;;  %v659_v33 = vld [vmem:[#allocation8 + $0x28] sm:$0xff]   ;;  %v506_v34 = vld [vmem:[%s942_s4] ss:$0 sm:$0xff]  ;;  %v660_v42 = vld [vmem:[#allocation8 + $0x30] sm:$0xff]  }
  0x53   :  { %v661_v43 = vld [vmem:[#allocation8 + $0x38] sm:$0xff]  }
  0x54   :  { %574 = vmatpush3.bf16.msra.mxu1 %v640_v6  ;;  %v516_v44 = vld [vmem:[%s942_s4 + $0x1] ss:$0 sm:$0xff]  ;;  %v525_v52 = vld [vmem:[%s944_s6] ss:$0 sm:$0xff]  ;;  %s792_s4 = smov [#allocation10]  }
  0x55   :  { %575 = vmatprep.subr.bf16.mxu1 %v790_v0  ;;  %592 = vmatpush3.bf16.msra.mxu0 %v647_v13  ;;  %s493_s8 = sshll.u32 %s792_s4, 4  ;;  %s494_s8 = int_to_ptr.vmem [resolvable:$true] %s493_s8 }
  0x56   :  { %593 = vmatprep.subr.bf16.mxu0 %v790_v0  ;;  %s754_s6 = scalar_lea.vmem %s494_s8, 128  ;;  %p759_p5 = scmp.lt.s32.totalorder %s494_s8, %s494_s8 }
  0x57   :  { %p755_p4 = scmp.ne.s32.totalorder %s494_s8, %s754_s6  ;;  %p760_p6 = scmp.lt.s32.totalorder %s754_s6, %s754_s6 }
  0x58   :  { %576 = vmatpush3.bf16.msra.mxu1 %v641_v7 }
  0x59   :  { %577 = vmatprep.subr.bf16.mxu1 %v790_v0  ;;  %594 = vmatpush3.bf16.msra.mxu0 %v648_v14  ;;  %p761_p7 = por %p760_p6, %p759_p5 }
  0x5a   :  { %595 = vmatprep.subr.bf16.mxu0 %v790_v0 }
  0x5b   :  { %p762_p8 = pnand %p761_p7, %p755_p4 }
  0x5c   :  { %578 = vmatpush3.bf16.msra.mxu1 %v642_v8 }
  0x5d   :  { %579 = vmatprep.subr.bf16.mxu1 %v790_v0  ;;  %596 = vmatpush3.bf16.msra.mxu0 %v649_v15 }
  0x5e   :  { %597 = vmatprep.subr.bf16.mxu0 %v790_v0 }
  0x60   :  { %580 = vmatpush3.bf16.msra.mxu1 %v643_v9 }
  0x61   :  { %581 = vmatprep.subr.bf16.mxu1 %v790_v0  ;;  %598 = vmatpush3.bf16.msra.mxu0 %v650_v16 }
  0x62   :  { %599 = vmatprep.subr.bf16.mxu0 %v790_v0 }
  0x64   :  { %582 = vmatpush3.bf16.msra.mxu1 %v644_v10 }
  0x65   :  { %583 = vmatprep.subr.bf16.mxu1 %v790_v0  ;;  %600 = vmatpush3.bf16.msra.mxu0 %v651_v17 }
  0x66   :  { %601 = vmatprep.subr.bf16.mxu0 %v790_v0 }
  0x68   :  { %584 = vmatpush3.bf16.msra.mxu1 %v645_v11 }
  0x69   :  { %609 = vmatprep.subr.bf16.mxu1 %v790_v0  ;;  %602 = vmatpush3.bf16.msra.mxu0 %v652_v26 }
  0x6a   :  { %603 = vmatprep.subr.bf16.mxu0 %v790_v0 }
  0x6d   :  { %604 = vmatpush3.bf16.msra.mxu0 %v653_v27 }
 0x122   :  { %v130_v19 = vpop.f32.mrb[0].mxu0 }
 0x123   :  { %v131_v20 = vadd.f32 %v504_v18, %v130_v19  ;;  %v567_v21 = vpop.f32.mrb[1].mxu0 }
 0x124   :  { %v133_v22 = vpop.f32.mrb[2].mxu0 }
 0x125   :  { %v136_v23 = vmax.f32 %v131_v20, 0.0  ;;  %v568_v24 = vpop.f32.mrb[3].mxu0 }
 0x127   :  { %v137_v25 = vpack.c.bf16 %v136_v23, %v136_v23 }
 0x129   :  { %586 = vmatmul.mubr.bf16.vlgmr.msra.gmra.mrb[0].mxu1 %v137_v25 }
 0x12a   :  { %625 = vmatprep.mubr.msk.bf16.mxu1 %vm791_vm0, %v790_v0  ;;  %610 = vmatpush3.bf16.msra.mxu1 %v654_v28 }
 0x12b   :  { %611 = vmatprep.subr.bf16.mxu1 %v790_v0 }
 0x12e   :  { %612 = vmatpush3.bf16.msra.mxu1 %v655_v29 }
 0x12f   :  { %613 = vmatprep.subr.bf16.mxu1 %v790_v0 }
 0x132   :  { %614 = vmatpush3.bf16.msra.mxu1 %v656_v30 }
 0x133   :  { %615 = vmatprep.subr.bf16.mxu1 %v790_v0 }
 0x136   :  { %616 = vmatpush3.bf16.msra.mxu1 %v657_v31 }
 0x137   :  { %617 = vmatprep.subr.bf16.mxu1 %v790_v0 }
 0x13a   :  { %618 = vmatpush3.bf16.msra.mxu1 %v658_v32 }
 0x13b   :  { %619 = vmatprep.subr.bf16.mxu1 %v790_v0 }
 0x13e   :  { %620 = vmatpush3.bf16.msra.mxu1 %v659_v33 }
 0x13f   :  { %621 = vmatprep.subr.bf16.mxu1 %v790_v0 }
 0x142   :  { %622 = vmatpush3.bf16.msra.mxu1 %v660_v42 }
 0x143   :  { %623 = vmatprep.subr.bf16.mxu1 %v790_v0 }
 0x146   :  { %624 = vmatpush3.bf16.msra.mxu1 %v661_v43 }
 0x1fc   :  { %v243_v35 = vpop.f32.mrb[0].mxu1 }
 0x1fd   :  { %v244_v36 = vadd.f32 %v506_v34, %v243_v35  ;;  %v587_v37 = vpop.f32.mrb[1].mxu1 }
 0x1fe   :  { %v246_v38 = vpop.f32.mrb[2].mxu1 }
 0x1ff   :  { %v249_v39 = vmax.f32 %v244_v36, 0.0  ;;  %v588_v40 = vpop.f32.mrb[3].mxu1 }
 0x201   :  { %v250_v41 = vpack.c.bf16 %v249_v39, %v249_v39 }
 0x203   :  { %606 = vmatmul.mubr.bf16.vlgmr.msra.gmra.mrb[4].mxu0 %v250_v41 }
 0x2d6   :  { %v358_v45 = vpop.f32.mrb[4].mxu0 }
 0x2d7   :  { %v359_v46 = vadd.f32 %v516_v44, %v358_v45  ;;  %v607_v47 = vpop.f32.mrb[5].mxu0 }
 0x2d8   :  { %v361_v48 = vpop.f32.mrb[6].mxu0 }
 0x2d9   :  { %v364_v49 = vmax.f32 %v359_v46, 0.0  ;;  %v608_v50 = vpop.f32.mrb[7].mxu0 }
 0x2db   :  { %v365_v51 = vpack.c.bf16 %v364_v49, %v364_v49 }
 0x2dd   :  { %626 = vmatmul.mubr.bf16.vlgmr.msra.gmra.mrb[4].mxu1 %v365_v51 }
 0x3b0   :  { %v471_v53 = vpop.f32.mrb[4].mxu1 }
 0x3b1   :  { %v472_v54 = vadd.f32 %v525_v52, %v471_v53  ;;  %v627_v55 = vpop.f32.mrb[5].mxu1 }
 0x3b2   :  { %v474_v56 = vpop.f32.mrb[6].mxu1 }
 0x3b3   :  { %477 = vmax.xlane.f32.xlu0 %v472_v54  ;;  %v628_v57 = vpop.f32.mrb[7].mxu1 }
 0x440   :  { %v478_v58 = vpop.xlane.xlu0 %477 }
 0x441   :  { %v479_v59 = vsub.f32 %v472_v54, %v478_v58 }
 0x443   :  { %v480_v60 = vmul.f32 1.442695, %v479_v59 }
 0x445   :  { %662 = vpow2.f32 %v480_v60 }
 0x44f   :  { %v663_v61 = vpop.eup %662 }
 0x450   :  { %482 = vadd.xlane.f32.xlu0 %v663_v61 }
 0x4dd   :  { %v483_v62 = vpop.xlane.xlu0 %482 }
 0x4de   :  { %664 = vrcp.f32 %v483_v62 }
 0x4e8   :  { %v665_v63 = vpop.eup %664 }
 0x4e9   :  { %v485_v0 = vmul.f32 %v665_v63, %v663_v61 }
 0x4eb   :  { %486 = vst [vmem:[#allocation10] sm:$0xff] %v485_v0 }
 0x4ec   :  { %765 = shalt.err (!%p762_p8)
}
 0x4ed   :  { %s766_s11 = scalar_lea.hbm %s945_s7, 128 }
 0x4ee   :  { %p767_p9 = scmp.ne.s32.totalorder %s945_s7, %s766_s11  ;;  %p770_p10 = scmp.lt.u32.totalorder %s766_s11, %s945_s7 }
 0x4f0   :  { %p772_p11 = pnand %p770_p10, %p767_p9 }
 0x4f2   :  { %775 = shalt.err (!%p772_p11)
}
 0x4f3   :  { %496 = dma.vmem_to_hbm [thread:$0]  %s494_s8, 128, %s945_s7, [#allocation4]  }
 0x4f4   :  { %782 = dma.done.wait [#allocation4], 128  }
 0x4f5   :  { %783 = vsyncadd [#allocation4], 4294967168 }
 0x4f6   :  { %500 = vsyncpa [#allocation3], 1 }
 0x4f7   :  { %501 = vsyncpa [#allocation6], 1 }
 0x4f8   :  { %502 = vsyncpa [#allocation9], 1 }
 0x4f9   :  { %503 = vsyncpa [#allocation4], 1 }

</bundles_post_ra>
